<compile_context>
chip_gen: v6e
topology: v6e:2x2x1
jax: 0.10.0
libtpu: 0.0.40
codegen_flags: <defaults>
</compile_context>

<pallas_src>
import jax
import jax.numpy as jnp
from jax import lax
from jax.experimental import pallas as pl
from jax.experimental.pallas import tpu as pltpu

F_IN = 5        # raw input features
F_CAT = 7       # after [x, var, mean] concat
H1 = 4
H2 = 2
BN_EPS = 1e-5

LANES = 128
SUBLANES = 8

# Packed SMEM parameter layout (float32 scalars, 48 words total):
#   [ 0:28)  W1  (7,4) row-major  -> W1[k, j] at W1_OFF + k*H1 + j
#   [28:32)  g1  (4,)   BatchNorm1d(4) gamma
#   [32:36)  be1 (4,)   BatchNorm1d(4) beta
#   [36:44)  W2  (4,2) row-major  -> W2[k, j] at W2_OFF + k*H2 + j
#   [44:46)  g2  (2,)   BatchNorm1d(2) gamma
#   [46:48)  be2 (2,)   BatchNorm1d(2) beta
W1_OFF = 0
G1_OFF = W1_OFF + F_CAT * H1     # 28
BE1_OFF = G1_OFF + H1            # 32
W2_OFF = BE1_OFF + H1            # 36
G2_OFF = W2_OFF + H1 * H2        # 44
BE2_OFF = G2_OFF + H2            # 46
P_LEN = BE2_OFF + H2             # 48

# Estimated single-block VMEM footprint above which we switch to the tiled path.
_SINGLE_BLOCK_EST_LIMIT = 32 * 2**20
_VMEM_LIMIT_CAP = 40 * 2**20


# ----------------------------------------------------------------------------------
# In-kernel helpers (all operate on dense (R, 128) tiles; batch lives on lanes+sublanes)
# ----------------------------------------------------------------------------------

def _lane_mask(n_true, shape, base):
    """1.0 where the (padded) flat batch index < true N, else 0.0."""
    r = lax.broadcasted_iota(jnp.int32, shape, 0)
    l = lax.broadcasted_iota(jnp.int32, shape, 1)
    flat = base + r * shape[1] + l
    return (flat < n_true).astype(jnp.float32)


def _load_feats(x_ref):
    """Load the 5 raw features and append per-sample unbiased var and mean.

    Equivalent to torch.cat((x, stack(var_mean(x, dim=1), dim=1)), dim=1); the concat
    is "virtual" -- we just keep a list of 7 (R,128) planes. Unrolled VPU adds (no XLU
    reductions needed for 5 elements)."""
    rows = [x_ref[k].astype(jnp.float32) for k in range(F_IN)]
    s = rows[0]
    for k in range(1, F_IN):
        s = s + rows[k]
    mean = s * (1.0 / F_IN)
    d = rows[0] - mean
    sq = d * d
    for k in range(1, F_IN):
        d = rows[k] - mean
        sq = sq + d * d
    var = sq * (1.0 / (F_IN - 1))           # unbiased (correction=1), like torch.var_mean
    return rows + [var, mean]               # column order [x.., var, mean]


def _linear(feats, p_ref, w_off, n_out):
    """Tiny (n_in x n_out) linear as unrolled scalar*vector MACs (no MXU).

    The Linear bias is intentionally omitted: it is cancelled by the following
    training-mode BatchNorm mean subtraction."""
    n_in = len(feats)
    outs = []
    for j in range(n_out):
        z = feats[0] * p_ref[w_off + j]
        for k in range(1, n_in):
            z = z + feats[k] * p_ref[w_off + k * n_out + j]
        outs.append(z)
    return outs


def _sum_all(a):
    """Full reduction of a (R,128) tile to (1,1): lane reduce then sublane reduce."""
    return jnp.sum(jnp.sum(a, axis=1, keepdims=True), axis=0, keepdims=True)


def _bn_layer(zs, p_ref, g_off, be_off, maskf, inv_n):
    """Training-mode BatchNorm over the (masked) full batch, single-pass moments."""
    ys = []
    for j, z in enumerate(zs):
        zm = z * maskf
        mean = _sum_all(zm) * inv_n                              # (1,1)
        ex2 = _sum_all(zm * z) * inv_n                           # (1,1)
        rstd = lax.rsqrt(jnp.maximum(ex2 - mean * mean, 0.0) + BN_EPS)
        ys.append((z - mean) * (rstd * p_ref[g_off + j]) + p_ref[be_off + j])
    return ys


def _bn_apply_stats(zs, p_ref, g_off, be_off, s_ref):
    """Apply BatchNorm with precomputed (mean, rstd) scalars from SMEM."""
    nf = len(zs)
    return [
        (zs[j] - s_ref[j]) * (s_ref[nf + j] * p_ref[g_off + j]) + p_ref[be_off + j]
        for j in range(nf)
    ]


def _acc_moments(mom_ref, zs, maskf):
    """Accumulate per-feature lane-partial sum / sum-of-squares into the resident
    (2*nf, 128) output block (finalized in the wrapper)."""
    nf = len(zs)
    for j in range(nf):
        zm = zs[j] * maskf
        s = jnp.sum(zm, axis=0, keepdims=True)                   # (1,128)
        ss = jnp.sum(zm * zs[j], axis=0, keepdims=True)          # (1,128)
        mom_ref[pl.ds(j, 1), :] = mom_ref[pl.ds(j, 1), :] + s
        mom_ref[pl.ds(nf + j, 1), :] = mom_ref[pl.ds(nf + j, 1), :] + ss


def _softmax2(a, b):
    """softmax over 2 classes == numerically stable logistic on the logit gap."""
    d = b - a
    e = jnp.exp(-jnp.abs(d))                                     # EUP
    r = 1.0 / (1.0 + e)
    p_hi = r
    p_lo = e * r
    ge = d >= 0.0
    return jnp.where(ge, p_lo, p_hi), jnp.where(ge, p_hi, p_lo)


# ----------------------------------------------------------------------------------
# Kernels
# ----------------------------------------------------------------------------------

def _fused_forward_kernel(n_ref, scal_ref, p_ref, x_ref, out_ref):
    """Single-block path: whole (padded) batch resident in VMEM."""
    r_blk = x_ref.shape[1]
    inv_n = scal_ref[0]                                          # 1 / true N (f32)
    maskf = _lane_mask(n_ref[0], (r_blk, LANES), 0)

    feats = _load_feats(x_ref)                                   # 7 x (R,128)
    z1 = _linear(feats, p_ref, W1_OFF, H1)
    y1 = _bn_layer(z1, p_ref, G1_OFF, BE1_OFF, maskf, inv_n)
    z2 = _linear(y1, p_ref, W2_OFF, H2)
    y2 = _bn_layer(z2, p_ref, G2_OFF, BE2_OFF, maskf, inv_n)

    p0, p1 = _softmax2(y2[0], y2[1])
    out_ref[0] = p0                                              # lane-dense row stores
    out_ref[1] = p1


def _z1_moments_kernel(n_ref, p_ref, x_ref, mom_ref):
    """Tiled pass 1: accumulate sum / sum-of-squares of z1 across batch tiles."""
    t = pl.program_id(0)

    @pl.when(t == 0)
    def _init():
        mom_ref[...] = jnp.zeros_like(mom_ref)

    r_blk = x_ref.shape[1]
    base = t * (r_blk * LANES)
    maskf = _lane_mask(n_ref[0], (r_blk, LANES), base)
    feats = _load_feats(x_ref)
    z1 = _linear(feats, p_ref, W1_OFF, H1)
    _acc_moments(mom_ref, z1, maskf)


def _z2_moments_kernel(n_ref, p_ref, s1_ref, x_ref, mom_ref):
    """Tiled pass 2: recompute z1, apply BN1 with finalized stats, accumulate z2 moments."""
    t = pl.program_id(0)

    @pl.when(t == 0)
    def _init():
        mom_ref[...] = jnp.zeros_like(mom_ref)

    r_blk = x_ref.shape[1]
    base = t * (r_blk * LANES)
    maskf = _lane_mask(n_ref[0], (r_blk, LANES), base)
    feats = _load_feats(x_ref)
    z1 = _linear(feats, p_ref, W1_OFF, H1)
    y1 = _bn_apply_stats(z1, p_ref, G1_OFF, BE1_OFF, s1_ref)
    z2 = _linear(y1, p_ref, W2_OFF, H2)
    _acc_moments(mom_ref, z2, maskf)


def _final_kernel(p_ref, s1_ref, s2_ref, x_ref, out_ref):
    """Tiled pass 3 (batch tiles independent -> 'parallel'): normalize + softmax + store."""
    feats = _load_feats(x_ref)
    z1 = _linear(feats, p_ref, W1_OFF, H1)
    y1 = _bn_apply_stats(z1, p_ref, G1_OFF, BE1_OFF, s1_ref)
    z2 = _linear(y1, p_ref, W2_OFF, H2)
    y2 = _bn_apply_stats(z2, p_ref, G2_OFF, BE2_OFF, s2_ref)
    p0, p1 = _softmax2(y2[0], y2[1])
    out_ref[0] = p0
    out_ref[1] = p1


# ----------------------------------------------------------------------------------
# Wrapper
# ----------------------------------------------------------------------------------

def _round_up(a, b):
    return (a + b - 1) // b * b


def pack_params(params):
    """Pack all kernel parameters into one small f32 array (lives in SMEM)."""
    return jnp.concatenate([
        params["w1"].reshape(-1),    # (7,4) row-major
        params["g1"].reshape(-1),
        params["be1"].reshape(-1),
        params["w2"].reshape(-1),    # (4,2) row-major
        params["g2"].reshape(-1),
        params["be2"].reshape(-1),
    ]).astype(jnp.float32)


def _prep_input(x1, n_pad):
    """Zero-pad the batch and reshape to the feature-major (F, R, 128) kernel layout."""
    n = x1.shape[0]
    xw = x1 if x1.dtype == jnp.bfloat16 else x1.astype(jnp.float32)
    xw = jnp.pad(xw, ((0, n_pad - n), (0, 0)))
    r = n_pad // LANES
    return xw.T.reshape(F_IN, r, LANES), r


def _finalize_stats(mom, n):
    """Lane-sum the accumulated moments and turn them into (mean, rstd) scalars."""
    nf = mom.shape[0] // 2
    mean = jnp.sum(mom[:nf], axis=1) / n
    ex2 = jnp.sum(mom[nf:], axis=1) / n
    var = jnp.maximum(ex2 - mean * mean, 0.0)
    return jnp.concatenate([mean, 1.0 / jnp.sqrt(var + BN_EPS)]).astype(jnp.float32)


def _forward_single_block(x1, packed, n, n_pad, r, est_bytes):
    x3, _ = _prep_input(x1, n_pad)
    n_arr = jnp.array([n], jnp.int32)
    inv_n = jnp.array([1.0 / n], jnp.float32)
    vmem_limit = int(min(max(2 * est_bytes, 16 * 2**20), _VMEM_LIMIT_CAP))

    out3 = pl.pallas_call(
        _fused_forward_kernel,
        out_shape=jax.ShapeDtypeStruct((H2, r, LANES), jnp.float32),
        in_specs=[
            pl.BlockSpec(memory_space=pltpu.SMEM),   # true N (mask)
            pl.BlockSpec(memory_space=pltpu.SMEM),   # 1/N
            pl.BlockSpec(memory_space=pltpu.SMEM),   # packed weights / BN params
            pl.BlockSpec(memory_space=pltpu.VMEM),   # x, feature-major (F, R, 128)
        ],
        out_specs=pl.BlockSpec(memory_space=pltpu.VMEM),
        compiler_params=pltpu.CompilerParams(vmem_limit_bytes=vmem_limit),
    )(n_arr, inv_n, packed, x3)
    return out3.reshape(H2, n_pad)[:, :n].T


def _forward_tiled(x1, packed, n, tile_rows):
    tile_rows = max(SUBLANES, _round_up(tile_rows, SUBLANES))
    tile_n = tile_rows * LANES
    n_pad = _round_up(max(n, 1), tile_n)
    x3, r = _prep_input(x1, n_pad)
    num_tiles = r // tile_rows
    n_arr = jnp.array([n], jnp.int32)

    smem = pl.BlockSpec(memory_space=pltpu.SMEM)
    x_spec = pl.BlockSpec((F_IN, tile_rows, LANES), lambda t: (0, t, 0))

    # Pass 1: z1 moments (output block resident across the 'arbitrary' tile axis).
    mom1 = pl.pallas_call(
        _z1_moments_kernel,
        out_shape=jax.ShapeDtypeStruct((2 * H1, LANES), jnp.float32),
        grid=(num_tiles,),
        in_specs=[smem, smem, x_spec],
        out_specs=pl.BlockSpec((2 * H1, LANES), lambda t: (0, 0)),
        compiler_params=pltpu.CompilerParams(dimension_semantics=("arbitrary",)),
    )(n_arr, packed, x3)
    stats1 = _finalize_stats(mom1, n)

    # Pass 2: z2 moments.
    mom2 = pl.pallas_call(
        _z2_moments_kernel,
        out_shape=jax.ShapeDtypeStruct((2 * H2, LANES), jnp.float32),
        grid=(num_tiles,),
        in_specs=[smem, smem, smem, x_spec],
        out_specs=pl.BlockSpec((2 * H2, LANES), lambda t: (0, 0)),
        compiler_params=pltpu.CompilerParams(dimension_semantics=("arbitrary",)),
    )(n_arr, packed, stats1, x3)
    stats2 = _finalize_stats(mom2, n)

    # Pass 3: normalize + softmax + store; batch tiles independent ('parallel' for v7x).
    out3 = pl.pallas_call(
        _final_kernel,
        out_shape=jax.ShapeDtypeStruct((H2, r, LANES), jnp.float32),
        grid=(num_tiles,),
        in_specs=[smem, smem, smem, x_spec],
        out_specs=pl.BlockSpec((H2, tile_rows, LANES), lambda t: (0, t, 0)),
        compiler_params=pltpu.CompilerParams(dimension_semantics=("parallel",)),
    )(packed, stats1, stats2, x3)
    return out3.reshape(H2, n_pad)[:, :n].T


def network_forward(x1, x2, params, *, tile_rows=512, force_tiled=False):
    """Forward pass of `Network`. x2 is unused (matches the PyTorch forward)."""
    del x2
    n = x1.shape[0]
    packed = pack_params(params)

    # Estimate the single-block VMEM footprint (input + output + intermediate planes).
    n_pad = _round_up(max(n, 1), SUBLANES * LANES)
    r = n_pad // LANES
    itemsize = 2 if x1.dtype == jnp.bfloat16 else 4
    est_bytes = r * LANES * (F_IN * itemsize + H2 * 4 + 16 * 4)

    if not force_tiled and est_bytes <= _SINGLE_BLOCK_EST_LIMIT:
        return _forward_single_block(x1, packed, n, n_pad, r, est_bytes)
    return _forward_tiled(x1, packed, n, tile_rows)


# ----------------------------------------------------------------------------------
# Reference / test
# ----------------------------------------------------------------------------------

def init_params(key):
    # Mimics nn.Linear default uniform init; BatchNorm affine params are randomized
    # (instead of torch's ones/zeros) so the correctness check exercises them.
    # b1/b2 are kept only for the reference: they are mathematically cancelled by
    # training-mode BatchNorm and never sent to the kernel.
    k1, k2, k3, k4, k5, k6, k7, k8 = jax.random.split(key, 8)
    lim1 = 1.0 / jnp.sqrt(7.0)
    lim2 = 1.0 / jnp.sqrt(4.0)
    return {
        "w1": jax.random.uniform(k1, (F_CAT, H1), jnp.float32, -lim1, lim1),
        "b1": jax.random.uniform(k2, (H1,), jnp.float32, -lim1, lim1),
        "g1": jax.random.uniform(k3, (H1,), jnp.float32, 0.5, 1.5),
        "be1": jax.random.uniform(k4, (H1,), jnp.float32, -0.5, 0.5),
        "w2": jax.random.uniform(k5, (H1, H2), jnp.float32, -lim2, lim2),
        "b2": jax.random.uniform(k6, (H2,), jnp.float32, -lim2, lim2),
        "g2": jax.random.uniform(k7, (H2,), jnp.float32, 0.5, 1.5),
        "be2": jax.random.uniform(k8, (H2,), jnp.float32, -0.5, 0.5),
    }


def reference_forward(x1, params):
    """Pure-JAX mirror of the PyTorch forward (including the Linear biases)."""
    var = jnp.var(x1, axis=1, ddof=1, keepdims=True)      # unbiased, like torch.var_mean
    mean = jnp.mean(x1, axis=1, keepdims=True)
    x7 = jnp.concatenate([x1, var, mean], axis=1)         # column order [x.., var, mean]

    z = x7 @ params["w1"] + params["b1"]
    mu = jnp.mean(z, axis=0, keepdims=True)
    v = jnp.var(z, axis=0, keepdims=True)                 # biased batch var
    z = (z - mu) / jnp.sqrt(v + BN_EPS) * params["g1"] + params["be1"]

    z = z @ params["w2"] + params["b2"]
    mu = jnp.mean(z, axis=0, keepdims=True)
    v = jnp.var(z, axis=0, keepdims=True)
    z = (z - mu) / jnp.sqrt(v + BN_EPS) * params["g2"] + params["be2"]

    return jax.nn.softmax(z, axis=1)


if __name__ == "__main__":
    key = jax.random.PRNGKey(0)
    kx, kp, kxb = jax.random.split(key, 3)
    params = init_params(kp)

    # --- Small batch (non-multiple of 128) -> single-block path, masked BN stats ---
    n_small = 96
    x1 = jax.random.normal(kx, (n_small, F_IN), jnp.float32)
    x2 = jnp.zeros((n_small, F_IN), jnp.float32)          # unused, mirrors the torch API
    out = jax.block_until_ready(network_forward(x1, x2, params))
    assert out.shape == (n_small, H2)
    assert bool(jnp.all(jnp.abs(jnp.sum(out, axis=1) - 1.0) < 1e-5))
    ref = reference_forward(x1, params)
    assert bool(jnp.allclose(out, ref, rtol=2e-4, atol=2e-4)), (out, ref)

    # --- Larger batch forced through the tiled 3-pass path (multiple batch tiles) ---
    n_big = 3000
    x1b = jax.random.normal(kxb, (n_big, F_IN), jnp.float32)
    x2b = jnp.zeros((n_big, F_IN), jnp.float32)
    out_t = jax.block_until_ready(
        network_forward(x1b, x2b, params, tile_rows=8, force_tiled=True))
    assert out_t.shape == (n_big, H2)
    ref_b = reference_forward(x1b, params)
    assert bool(jnp.allclose(out_t, ref_b, rtol=2e-4, atol=2e-4)), (out_t, ref_b)

    print("KERNEL_OK")
</pallas_src>

<mosaic_0001>
module attributes {stable_mosaic.version = 11 : i64} {
  func.func @_fused_forward_kernel(%arg0: memref<1xi32, #tpu.memory_space<smem>>, %arg1: memref<1xf32, #tpu.memory_space<smem>>, %arg2: memref<48xf32, #tpu.memory_space<smem>>, %arg3: memref<5x8x128xf32, #tpu.memory_space<vmem>>, %arg4: memref<2x8x128xf32, #tpu.memory_space<vmem>>) attributes {dimension_semantics = [], scalar_prefetch = 0 : i64, scratch_operands = 0 : i64, tpu.core_type = #tpu.core_type<tc>} {
    %c0 = arith.constant 0 : index
    %0 = memref.load %arg1[%c0] : memref<1xf32, #tpu.memory_space<smem>>
    %c0_0 = arith.constant 0 : index
    %1 = memref.load %arg0[%c0_0] : memref<1xi32, #tpu.memory_space<smem>>
    %2 = tpu.iota {dimensions = array<i32: 0>} : vector<8x128xi32>
    %3 = tpu.iota {dimensions = array<i32: 1>} : vector<8x128xi32>
    %c128_i32 = arith.constant 128 : i32
    %4 = vector.broadcast %c128_i32 : i32 to vector<8x128xi32>
    %5 = arith.muli %2, %4 : vector<8x128xi32>
    %c0_i32 = arith.constant 0 : i32
    %6 = vector.broadcast %c0_i32 : i32 to vector<8x128xi32>
    %7 = arith.addi %6, %5 : vector<8x128xi32>
    %8 = arith.addi %7, %3 : vector<8x128xi32>
    %9 = vector.broadcast %1 : i32 to vector<8x128xi32>
    %10 = arith.cmpi slt, %8, %9 : vector<8x128xi32>
    %11 = arith.extui %10 : vector<8x128xi1> to vector<8x128xi32>
    %12 = arith.sitofp %11 : vector<8x128xi32> to vector<8x128xf32>
    %c0_1 = arith.constant 0 : index
    %c0_2 = arith.constant 0 : index
    %c0_3 = arith.constant 0 : index
    %13 = vector.load %arg3[%c0_1, %c0_2, %c0_3] : memref<5x8x128xf32, #tpu.memory_space<vmem>>, vector<1x8x128xf32>
    %14 = vector.shape_cast %13 : vector<1x8x128xf32> to vector<8x128xf32>
    %c1 = arith.constant 1 : index
    %c0_4 = arith.constant 0 : index
    %c0_5 = arith.constant 0 : index
    %15 = vector.load %arg3[%c1, %c0_4, %c0_5] : memref<5x8x128xf32, #tpu.memory_space<vmem>>, vector<1x8x128xf32>
    %16 = vector.shape_cast %15 : vector<1x8x128xf32> to vector<8x128xf32>
    %c2 = arith.constant 2 : index
    %c0_6 = arith.constant 0 : index
    %c0_7 = arith.constant 0 : index
    %17 = vector.load %arg3[%c2, %c0_6, %c0_7] : memref<5x8x128xf32, #tpu.memory_space<vmem>>, vector<1x8x128xf32>
    %18 = vector.shape_cast %17 : vector<1x8x128xf32> to vector<8x128xf32>
    %c3 = arith.constant 3 : index
    %c0_8 = arith.constant 0 : index
    %c0_9 = arith.constant 0 : index
    %19 = vector.load %arg3[%c3, %c0_8, %c0_9] : memref<5x8x128xf32, #tpu.memory_space<vmem>>, vector<1x8x128xf32>
    %20 = vector.shape_cast %19 : vector<1x8x128xf32> to vector<8x128xf32>
    %c4 = arith.constant 4 : index
    %c0_10 = arith.constant 0 : index
    %c0_11 = arith.constant 0 : index
    %21 = vector.load %arg3[%c4, %c0_10, %c0_11] : memref<5x8x128xf32, #tpu.memory_space<vmem>>, vector<1x8x128xf32>
    %22 = vector.shape_cast %21 : vector<1x8x128xf32> to vector<8x128xf32>
    %23 = arith.addf %14, %16 : vector<8x128xf32>
    %24 = arith.addf %23, %18 : vector<8x128xf32>
    %25 = arith.addf %24, %20 : vector<8x128xf32>
    %26 = arith.addf %25, %22 : vector<8x128xf32>
    %cst = arith.constant 2.000000e-01 : f32
    %27 = vector.broadcast %cst : f32 to vector<8x128xf32>
    %28 = arith.mulf %26, %27 : vector<8x128xf32>
    %29 = arith.subf %14, %28 : vector<8x128xf32>
    %30 = arith.mulf %29, %29 : vector<8x128xf32>
    %31 = arith.subf %16, %28 : vector<8x128xf32>
    %32 = arith.mulf %31, %31 : vector<8x128xf32>
    %33 = arith.addf %30, %32 : vector<8x128xf32>
    %34 = arith.subf %18, %28 : vector<8x128xf32>
    %35 = arith.mulf %34, %34 : vector<8x128xf32>
    %36 = arith.addf %33, %35 : vector<8x128xf32>
    %37 = arith.subf %20, %28 : vector<8x128xf32>
    %38 = arith.mulf %37, %37 : vector<8x128xf32>
    %39 = arith.addf %36, %38 : vector<8x128xf32>
    %40 = arith.subf %22, %28 : vector<8x128xf32>
    %41 = arith.mulf %40, %40 : vector<8x128xf32>
    %42 = arith.addf %39, %41 : vector<8x128xf32>
    %cst_12 = arith.constant 2.500000e-01 : f32
    %43 = vector.broadcast %cst_12 : f32 to vector<8x128xf32>
    %44 = arith.mulf %42, %43 : vector<8x128xf32>
    %c0_13 = arith.constant 0 : index
    %45 = memref.load %arg2[%c0_13] : memref<48xf32, #tpu.memory_space<smem>>
    %46 = vector.broadcast %45 : f32 to vector<8x128xf32>
    %47 = arith.mulf %14, %46 : vector<8x128xf32>
    %c4_14 = arith.constant 4 : index
    %48 = memref.load %arg2[%c4_14] : memref<48xf32, #tpu.memory_space<smem>>
    %49 = vector.broadcast %48 : f32 to vector<8x128xf32>
    %50 = arith.mulf %16, %49 : vector<8x128xf32>
    %51 = arith.addf %47, %50 : vector<8x128xf32>
    %c8 = arith.constant 8 : index
    %52 = memref.load %arg2[%c8] : memref<48xf32, #tpu.memory_space<smem>>
    %53 = vector.broadcast %52 : f32 to vector<8x128xf32>
    %54 = arith.mulf %18, %53 : vector<8x128xf32>
    %55 = arith.addf %51, %54 : vector<8x128xf32>
    %c12 = arith.constant 12 : index
    %56 = memref.load %arg2[%c12] : memref<48xf32, #tpu.memory_space<smem>>
    %57 = vector.broadcast %56 : f32 to vector<8x128xf32>
    %58 = arith.mulf %20, %57 : vector<8x128xf32>
    %59 = arith.addf %55, %58 : vector<8x128xf32>
    %c16 = arith.constant 16 : index
    %60 = memref.load %arg2[%c16] : memref<48xf32, #tpu.memory_space<smem>>
    %61 = vector.broadcast %60 : f32 to vector<8x128xf32>
    %62 = arith.mulf %22, %61 : vector<8x128xf32>
    %63 = arith.addf %59, %62 : vector<8x128xf32>
    %c20 = arith.constant 20 : index
    %64 = memref.load %arg2[%c20] : memref<48xf32, #tpu.memory_space<smem>>
    %65 = vector.broadcast %64 : f32 to vector<8x128xf32>
    %66 = arith.mulf %44, %65 : vector<8x128xf32>
    %67 = arith.addf %63, %66 : vector<8x128xf32>
    %c24 = arith.constant 24 : index
    %68 = memref.load %arg2[%c24] : memref<48xf32, #tpu.memory_space<smem>>
    %69 = vector.broadcast %68 : f32 to vector<8x128xf32>
    %70 = arith.mulf %28, %69 : vector<8x128xf32>
    %71 = arith.addf %67, %70 : vector<8x128xf32>
    %c1_15 = arith.constant 1 : index
    %72 = memref.load %arg2[%c1_15] : memref<48xf32, #tpu.memory_space<smem>>
    %73 = vector.broadcast %72 : f32 to vector<8x128xf32>
    %74 = arith.mulf %14, %73 : vector<8x128xf32>
    %c5 = arith.constant 5 : index
    %75 = memref.load %arg2[%c5] : memref<48xf32, #tpu.memory_space<smem>>
    %76 = vector.broadcast %75 : f32 to vector<8x128xf32>
    %77 = arith.mulf %16, %76 : vector<8x128xf32>
    %78 = arith.addf %74, %77 : vector<8x128xf32>
    %c9 = arith.constant 9 : index
    %79 = memref.load %arg2[%c9] : memref<48xf32, #tpu.memory_space<smem>>
    %80 = vector.broadcast %79 : f32 to vector<8x128xf32>
    %81 = arith.mulf %18, %80 : vector<8x128xf32>
    %82 = arith.addf %78, %81 : vector<8x128xf32>
    %c13 = arith.constant 13 : index
    %83 = memref.load %arg2[%c13] : memref<48xf32, #tpu.memory_space<smem>>
    %84 = vector.broadcast %83 : f32 to vector<8x128xf32>
    %85 = arith.mulf %20, %84 : vector<8x128xf32>
    %86 = arith.addf %82, %85 : vector<8x128xf32>
    %c17 = arith.constant 17 : index
    %87 = memref.load %arg2[%c17] : memref<48xf32, #tpu.memory_space<smem>>
    %88 = vector.broadcast %87 : f32 to vector<8x128xf32>
    %89 = arith.mulf %22, %88 : vector<8x128xf32>
    %90 = arith.addf %86, %89 : vector<8x128xf32>
    %c21 = arith.constant 21 : index
    %91 = memref.load %arg2[%c21] : memref<48xf32, #tpu.memory_space<smem>>
    %92 = vector.broadcast %91 : f32 to vector<8x128xf32>
    %93 = arith.mulf %44, %92 : vector<8x128xf32>
    %94 = arith.addf %90, %93 : vector<8x128xf32>
    %c25 = arith.constant 25 : index
    %95 = memref.load %arg2[%c25] : memref<48xf32, #tpu.memory_space<smem>>
    %96 = vector.broadcast %95 : f32 to vector<8x128xf32>
    %97 = arith.mulf %28, %96 : vector<8x128xf32>
    %98 = arith.addf %94, %97 : vector<8x128xf32>
    %c2_16 = arith.constant 2 : index
    %99 = memref.load %arg2[%c2_16] : memref<48xf32, #tpu.memory_space<smem>>
    %100 = vector.broadcast %99 : f32 to vector<8x128xf32>
    %101 = arith.mulf %14, %100 : vector<8x128xf32>
    %c6 = arith.constant 6 : index
    %102 = memref.load %arg2[%c6] : memref<48xf32, #tpu.memory_space<smem>>
    %103 = vector.broadcast %102 : f32 to vector<8x128xf32>
    %104 = arith.mulf %16, %103 : vector<8x128xf32>
    %105 = arith.addf %101, %104 : vector<8x128xf32>
    %c10 = arith.constant 10 : index
    %106 = memref.load %arg2[%c10] : memref<48xf32, #tpu.memory_space<smem>>
    %107 = vector.broadcast %106 : f32 to vector<8x128xf32>
    %108 = arith.mulf %18, %107 : vector<8x128xf32>
    %109 = arith.addf %105, %108 : vector<8x128xf32>
    %c14 = arith.constant 14 : index
    %110 = memref.load %arg2[%c14] : memref<48xf32, #tpu.memory_space<smem>>
    %111 = vector.broadcast %110 : f32 to vector<8x128xf32>
    %112 = arith.mulf %20, %111 : vector<8x128xf32>
    %113 = arith.addf %109, %112 : vector<8x128xf32>
    %c18 = arith.constant 18 : index
    %114 = memref.load %arg2[%c18] : memref<48xf32, #tpu.memory_space<smem>>
    %115 = vector.broadcast %114 : f32 to vector<8x128xf32>
    %116 = arith.mulf %22, %115 : vector<8x128xf32>
    %117 = arith.addf %113, %116 : vector<8x128xf32>
    %c22 = arith.constant 22 : index
    %118 = memref.load %arg2[%c22] : memref<48xf32, #tpu.memory_space<smem>>
    %119 = vector.broadcast %118 : f32 to vector<8x128xf32>
    %120 = arith.mulf %44, %119 : vector<8x128xf32>
    %121 = arith.addf %117, %120 : vector<8x128xf32>
    %c26 = arith.constant 26 : index
    %122 = memref.load %arg2[%c26] : memref<48xf32, #tpu.memory_space<smem>>
    %123 = vector.broadcast %122 : f32 to vector<8x128xf32>
    %124 = arith.mulf %28, %123 : vector<8x128xf32>
    %125 = arith.addf %121, %124 : vector<8x128xf32>
    %c3_17 = arith.constant 3 : index
    %126 = memref.load %arg2[%c3_17] : memref<48xf32, #tpu.memory_space<smem>>
    %127 = vector.broadcast %126 : f32 to vector<8x128xf32>
    %128 = arith.mulf %14, %127 : vector<8x128xf32>
    %c7 = arith.constant 7 : index
    %129 = memref.load %arg2[%c7] : memref<48xf32, #tpu.memory_space<smem>>
    %130 = vector.broadcast %129 : f32 to vector<8x128xf32>
    %131 = arith.mulf %16, %130 : vector<8x128xf32>
    %132 = arith.addf %128, %131 : vector<8x128xf32>
    %c11 = arith.constant 11 : index
    %133 = memref.load %arg2[%c11] : memref<48xf32, #tpu.memory_space<smem>>
    %134 = vector.broadcast %133 : f32 to vector<8x128xf32>
    %135 = arith.mulf %18, %134 : vector<8x128xf32>
    %136 = arith.addf %132, %135 : vector<8x128xf32>
    %c15 = arith.constant 15 : index
    %137 = memref.load %arg2[%c15] : memref<48xf32, #tpu.memory_space<smem>>
    %138 = vector.broadcast %137 : f32 to vector<8x128xf32>
    %139 = arith.mulf %20, %138 : vector<8x128xf32>
    %140 = arith.addf %136, %139 : vector<8x128xf32>
    %c19 = arith.constant 19 : index
    %141 = memref.load %arg2[%c19] : memref<48xf32, #tpu.memory_space<smem>>
    %142 = vector.broadcast %141 : f32 to vector<8x128xf32>
    %143 = arith.mulf %22, %142 : vector<8x128xf32>
    %144 = arith.addf %140, %143 : vector<8x128xf32>
    %c23 = arith.constant 23 : index
    %145 = memref.load %arg2[%c23] : memref<48xf32, #tpu.memory_space<smem>>
    %146 = vector.broadcast %145 : f32 to vector<8x128xf32>
    %147 = arith.mulf %44, %146 : vector<8x128xf32>
    %148 = arith.addf %144, %147 : vector<8x128xf32>
    %c27 = arith.constant 27 : index
    %149 = memref.load %arg2[%c27] : memref<48xf32, #tpu.memory_space<smem>>
    %150 = vector.broadcast %149 : f32 to vector<8x128xf32>
    %151 = arith.mulf %28, %150 : vector<8x128xf32>
    %152 = arith.addf %148, %151 : vector<8x128xf32>
    %153 = arith.mulf %71, %12 : vector<8x128xf32>
    %cst_18 = arith.constant dense<0.000000e+00> : vector<8xf32>
    %154 = vector.multi_reduction <add>, %153, %cst_18 [1] : vector<8x128xf32> to vector<8xf32>
    %155 = vector.shape_cast %154 : vector<8xf32> to vector<8x1xf32>
    %cst_19 = arith.constant dense<0.000000e+00> : vector<1xf32>
    %156 = vector.multi_reduction <add>, %155, %cst_19 [0] : vector<8x1xf32> to vector<1xf32>
    %157 = vector.shape_cast %156 : vector<1xf32> to vector<1x1xf32>
    %158 = vector.broadcast %0 : f32 to vector<1x1xf32>
    %159 = arith.mulf %157, %158 : vector<1x1xf32>
    %160 = arith.mulf %153, %71 : vector<8x128xf32>
    %cst_20 = arith.constant dense<0.000000e+00> : vector<8xf32>
    %161 = vector.multi_reduction <add>, %160, %cst_20 [1] : vector<8x128xf32> to vector<8xf32>
    %162 = vector.shape_cast %161 : vector<8xf32> to vector<8x1xf32>
    %cst_21 = arith.constant dense<0.000000e+00> : vector<1xf32>
    %163 = vector.multi_reduction <add>, %162, %cst_21 [0] : vector<8x1xf32> to vector<1xf32>
    %164 = vector.shape_cast %163 : vector<1xf32> to vector<1x1xf32>
    %165 = vector.broadcast %0 : f32 to vector<1x1xf32>
    %166 = arith.mulf %164, %165 : vector<1x1xf32>
    %167 = arith.mulf %159, %159 : vector<1x1xf32>
    %168 = arith.subf %166, %167 : vector<1x1xf32>
    %cst_22 = arith.constant 0.000000e+00 : f32
    %169 = vector.broadcast %cst_22 : f32 to vector<1x1xf32>
    %170 = arith.maximumf %168, %169 : vector<1x1xf32>
    %cst_23 = arith.constant 9.99999974E-6 : f32
    %171 = vector.broadcast %cst_23 : f32 to vector<1x1xf32>
    %172 = arith.addf %170, %171 : vector<1x1xf32>
    %173 = math.rsqrt %172 : vector<1x1xf32>
    %174 = vector.broadcast %159 : vector<1x1xf32> to vector<8x128xf32>
    %175 = arith.subf %71, %174 : vector<8x128xf32>
    %c28 = arith.constant 28 : index
    %176 = memref.load %arg2[%c28] : memref<48xf32, #tpu.memory_space<smem>>
    %177 = vector.broadcast %176 : f32 to vector<1x1xf32>
    %178 = arith.mulf %173, %177 : vector<1x1xf32>
    %179 = vector.broadcast %178 : vector<1x1xf32> to vector<8x128xf32>
    %180 = arith.mulf %175, %179 : vector<8x128xf32>
    %c32 = arith.constant 32 : index
    %181 = memref.load %arg2[%c32] : memref<48xf32, #tpu.memory_space<smem>>
    %182 = vector.broadcast %181 : f32 to vector<8x128xf32>
    %183 = arith.addf %180, %182 : vector<8x128xf32>
    %184 = arith.mulf %98, %12 : vector<8x128xf32>
    %cst_24 = arith.constant dense<0.000000e+00> : vector<8xf32>
    %185 = vector.multi_reduction <add>, %184, %cst_24 [1] : vector<8x128xf32> to vector<8xf32>
    %186 = vector.shape_cast %185 : vector<8xf32> to vector<8x1xf32>
    %cst_25 = arith.constant dense<0.000000e+00> : vector<1xf32>
    %187 = vector.multi_reduction <add>, %186, %cst_25 [0] : vector<8x1xf32> to vector<1xf32>
    %188 = vector.shape_cast %187 : vector<1xf32> to vector<1x1xf32>
    %189 = vector.broadcast %0 : f32 to vector<1x1xf32>
    %190 = arith.mulf %188, %189 : vector<1x1xf32>
    %191 = arith.mulf %184, %98 : vector<8x128xf32>
    %cst_26 = arith.constant dense<0.000000e+00> : vector<8xf32>
    %192 = vector.multi_reduction <add>, %191, %cst_26 [1] : vector<8x128xf32> to vector<8xf32>
    %193 = vector.shape_cast %192 : vector<8xf32> to vector<8x1xf32>
    %cst_27 = arith.constant dense<0.000000e+00> : vector<1xf32>
    %194 = vector.multi_reduction <add>, %193, %cst_27 [0] : vector<8x1xf32> to vector<1xf32>
    %195 = vector.shape_cast %194 : vector<1xf32> to vector<1x1xf32>
    %196 = vector.broadcast %0 : f32 to vector<1x1xf32>
    %197 = arith.mulf %195, %196 : vector<1x1xf32>
    %198 = arith.mulf %190, %190 : vector<1x1xf32>
    %199 = arith.subf %197, %198 : vector<1x1xf32>
    %cst_28 = arith.constant 0.000000e+00 : f32
    %200 = vector.broadcast %cst_28 : f32 to vector<1x1xf32>
    %201 = arith.maximumf %199, %200 : vector<1x1xf32>
    %cst_29 = arith.constant 9.99999974E-6 : f32
    %202 = vector.broadcast %cst_29 : f32 to vector<1x1xf32>
    %203 = arith.addf %201, %202 : vector<1x1xf32>
    %204 = math.rsqrt %203 : vector<1x1xf32>
    %205 = vector.broadcast %190 : vector<1x1xf32> to vector<8x128xf32>
    %206 = arith.subf %98, %205 : vector<8x128xf32>
    %c29 = arith.constant 29 : index
    %207 = memref.load %arg2[%c29] : memref<48xf32, #tpu.memory_space<smem>>
    %208 = vector.broadcast %207 : f32 to vector<1x1xf32>
    %209 = arith.mulf %204, %208 : vector<1x1xf32>
    %210 = vector.broadcast %209 : vector<1x1xf32> to vector<8x128xf32>
    %211 = arith.mulf %206, %210 : vector<8x128xf32>
    %c33 = arith.constant 33 : index
    %212 = memref.load %arg2[%c33] : memref<48xf32, #tpu.memory_space<smem>>
    %213 = vector.broadcast %212 : f32 to vector<8x128xf32>
    %214 = arith.addf %211, %213 : vector<8x128xf32>
    %215 = arith.mulf %125, %12 : vector<8x128xf32>
    %cst_30 = arith.constant dense<0.000000e+00> : vector<8xf32>
    %216 = vector.multi_reduction <add>, %215, %cst_30 [1] : vector<8x128xf32> to vector<8xf32>
    %217 = vector.shape_cast %216 : vector<8xf32> to vector<8x1xf32>
    %cst_31 = arith.constant dense<0.000000e+00> : vector<1xf32>
    %218 = vector.multi_reduction <add>, %217, %cst_31 [0] : vector<8x1xf32> to vector<1xf32>
    %219 = vector.shape_cast %218 : vector<1xf32> to vector<1x1xf32>
    %220 = vector.broadcast %0 : f32 to vector<1x1xf32>
    %221 = arith.mulf %219, %220 : vector<1x1xf32>
    %222 = arith.mulf %215, %125 : vector<8x128xf32>
    %cst_32 = arith.constant dense<0.000000e+00> : vector<8xf32>
    %223 = vector.multi_reduction <add>, %222, %cst_32 [1] : vector<8x128xf32> to vector<8xf32>
    %224 = vector.shape_cast %223 : vector<8xf32> to vector<8x1xf32>
    %cst_33 = arith.constant dense<0.000000e+00> : vector<1xf32>
    %225 = vector.multi_reduction <add>, %224, %cst_33 [0] : vector<8x1xf32> to vector<1xf32>
    %226 = vector.shape_cast %225 : vector<1xf32> to vector<1x1xf32>
    %227 = vector.broadcast %0 : f32 to vector<1x1xf32>
    %228 = arith.mulf %226, %227 : vector<1x1xf32>
    %229 = arith.mulf %221, %221 : vector<1x1xf32>
    %230 = arith.subf %228, %229 : vector<1x1xf32>
    %cst_34 = arith.constant 0.000000e+00 : f32
    %231 = vector.broadcast %cst_34 : f32 to vector<1x1xf32>
    %232 = arith.maximumf %230, %231 : vector<1x1xf32>
    %cst_35 = arith.constant 9.99999974E-6 : f32
    %233 = vector.broadcast %cst_35 : f32 to vector<1x1xf32>
    %234 = arith.addf %232, %233 : vector<1x1xf32>
    %235 = math.rsqrt %234 : vector<1x1xf32>
    %236 = vector.broadcast %221 : vector<1x1xf32> to vector<8x128xf32>
    %237 = arith.subf %125, %236 : vector<8x128xf32>
    %c30 = arith.constant 30 : index
    %238 = memref.load %arg2[%c30] : memref<48xf32, #tpu.memory_space<smem>>
    %239 = vector.broadcast %238 : f32 to vector<1x1xf32>
    %240 = arith.mulf %235, %239 : vector<1x1xf32>
    %241 = vector.broadcast %240 : vector<1x1xf32> to vector<8x128xf32>
    %242 = arith.mulf %237, %241 : vector<8x128xf32>
    %c34 = arith.constant 34 : index
    %243 = memref.load %arg2[%c34] : memref<48xf32, #tpu.memory_space<smem>>
    %244 = vector.broadcast %243 : f32 to vector<8x128xf32>
    %245 = arith.addf %242, %244 : vector<8x128xf32>
    %246 = arith.mulf %152, %12 : vector<8x128xf32>
    %cst_36 = arith.constant dense<0.000000e+00> : vector<8xf32>
    %247 = vector.multi_reduction <add>, %246, %cst_36 [1] : vector<8x128xf32> to vector<8xf32>
    %248 = vector.shape_cast %247 : vector<8xf32> to vector<8x1xf32>
    %cst_37 = arith.constant dense<0.000000e+00> : vector<1xf32>
    %249 = vector.multi_reduction <add>, %248, %cst_37 [0] : vector<8x1xf32> to vector<1xf32>
    %250 = vector.shape_cast %249 : vector<1xf32> to vector<1x1xf32>
    %251 = vector.broadcast %0 : f32 to vector<1x1xf32>
    %252 = arith.mulf %250, %251 : vector<1x1xf32>
    %253 = arith.mulf %246, %152 : vector<8x128xf32>
    %cst_38 = arith.constant dense<0.000000e+00> : vector<8xf32>
    %254 = vector.multi_reduction <add>, %253, %cst_38 [1] : vector<8x128xf32> to vector<8xf32>
    %255 = vector.shape_cast %254 : vector<8xf32> to vector<8x1xf32>
    %cst_39 = arith.constant dense<0.000000e+00> : vector<1xf32>
    %256 = vector.multi_reduction <add>, %255, %cst_39 [0] : vector<8x1xf32> to vector<1xf32>
    %257 = vector.shape_cast %256 : vector<1xf32> to vector<1x1xf32>
    %258 = vector.broadcast %0 : f32 to vector<1x1xf32>
    %259 = arith.mulf %257, %258 : vector<1x1xf32>
    %260 = arith.mulf %252, %252 : vector<1x1xf32>
    %261 = arith.subf %259, %260 : vector<1x1xf32>
    %cst_40 = arith.constant 0.000000e+00 : f32
    %262 = vector.broadcast %cst_40 : f32 to vector<1x1xf32>
    %263 = arith.maximumf %261, %262 : vector<1x1xf32>
    %cst_41 = arith.constant 9.99999974E-6 : f32
    %264 = vector.broadcast %cst_41 : f32 to vector<1x1xf32>
    %265 = arith.addf %263, %264 : vector<1x1xf32>
    %266 = math.rsqrt %265 : vector<1x1xf32>
    %267 = vector.broadcast %252 : vector<1x1xf32> to vector<8x128xf32>
    %268 = arith.subf %152, %267 : vector<8x128xf32>
    %c31 = arith.constant 31 : index
    %269 = memref.load %arg2[%c31] : memref<48xf32, #tpu.memory_space<smem>>
    %270 = vector.broadcast %269 : f32 to vector<1x1xf32>
    %271 = arith.mulf %266, %270 : vector<1x1xf32>
    %272 = vector.broadcast %271 : vector<1x1xf32> to vector<8x128xf32>
    %273 = arith.mulf %268, %272 : vector<8x128xf32>
    %c35 = arith.constant 35 : index
    %274 = memref.load %arg2[%c35] : memref<48xf32, #tpu.memory_space<smem>>
    %275 = vector.broadcast %274 : f32 to vector<8x128xf32>
    %276 = arith.addf %273, %275 : vector<8x128xf32>
    %c36 = arith.constant 36 : index
    %277 = memref.load %arg2[%c36] : memref<48xf32, #tpu.memory_space<smem>>
    %278 = vector.broadcast %277 : f32 to vector<8x128xf32>
    %279 = arith.mulf %183, %278 : vector<8x128xf32>
    %c38 = arith.constant 38 : index
    %280 = memref.load %arg2[%c38] : memref<48xf32, #tpu.memory_space<smem>>
    %281 = vector.broadcast %280 : f32 to vector<8x128xf32>
    %282 = arith.mulf %214, %281 : vector<8x128xf32>
    %283 = arith.addf %279, %282 : vector<8x128xf32>
    %c40 = arith.constant 40 : index
    %284 = memref.load %arg2[%c40] : memref<48xf32, #tpu.memory_space<smem>>
    %285 = vector.broadcast %284 : f32 to vector<8x128xf32>
    %286 = arith.mulf %245, %285 : vector<8x128xf32>
    %287 = arith.addf %283, %286 : vector<8x128xf32>
    %c42 = arith.constant 42 : index
    %288 = memref.load %arg2[%c42] : memref<48xf32, #tpu.memory_space<smem>>
    %289 = vector.broadcast %288 : f32 to vector<8x128xf32>
    %290 = arith.mulf %276, %289 : vector<8x128xf32>
    %291 = arith.addf %287, %290 : vector<8x128xf32>
    %c37 = arith.constant 37 : index
    %292 = memref.load %arg2[%c37] : memref<48xf32, #tpu.memory_space<smem>>
    %293 = vector.broadcast %292 : f32 to vector<8x128xf32>
    %294 = arith.mulf %183, %293 : vector<8x128xf32>
    %c39 = arith.constant 39 : index
    %295 = memref.load %arg2[%c39] : memref<48xf32, #tpu.memory_space<smem>>
    %296 = vector.broadcast %295 : f32 to vector<8x128xf32>
    %297 = arith.mulf %214, %296 : vector<8x128xf32>
    %298 = arith.addf %294, %297 : vector<8x128xf32>
    %c41 = arith.constant 41 : index
    %299 = memref.load %arg2[%c41] : memref<48xf32, #tpu.memory_space<smem>>
    %300 = vector.broadcast %299 : f32 to vector<8x128xf32>
    %301 = arith.mulf %245, %300 : vector<8x128xf32>
    %302 = arith.addf %298, %301 : vector<8x128xf32>
    %c43 = arith.constant 43 : index
    %303 = memref.load %arg2[%c43] : memref<48xf32, #tpu.memory_space<smem>>
    %304 = vector.broadcast %303 : f32 to vector<8x128xf32>
    %305 = arith.mulf %276, %304 : vector<8x128xf32>
    %306 = arith.addf %302, %305 : vector<8x128xf32>
    %307 = arith.mulf %291, %12 : vector<8x128xf32>
    %cst_42 = arith.constant dense<0.000000e+00> : vector<8xf32>
    %308 = vector.multi_reduction <add>, %307, %cst_42 [1] : vector<8x128xf32> to vector<8xf32>
    %309 = vector.shape_cast %308 : vector<8xf32> to vector<8x1xf32>
    %cst_43 = arith.constant dense<0.000000e+00> : vector<1xf32>
    %310 = vector.multi_reduction <add>, %309, %cst_43 [0] : vector<8x1xf32> to vector<1xf32>
    %311 = vector.shape_cast %310 : vector<1xf32> to vector<1x1xf32>
    %312 = vector.broadcast %0 : f32 to vector<1x1xf32>
    %313 = arith.mulf %311, %312 : vector<1x1xf32>
    %314 = arith.mulf %307, %291 : vector<8x128xf32>
    %cst_44 = arith.constant dense<0.000000e+00> : vector<8xf32>
    %315 = vector.multi_reduction <add>, %314, %cst_44 [1] : vector<8x128xf32> to vector<8xf32>
    %316 = vector.shape_cast %315 : vector<8xf32> to vector<8x1xf32>
    %cst_45 = arith.constant dense<0.000000e+00> : vector<1xf32>
    %317 = vector.multi_reduction <add>, %316, %cst_45 [0] : vector<8x1xf32> to vector<1xf32>
    %318 = vector.shape_cast %317 : vector<1xf32> to vector<1x1xf32>
    %319 = vector.broadcast %0 : f32 to vector<1x1xf32>
    %320 = arith.mulf %318, %319 : vector<1x1xf32>
    %321 = arith.mulf %313, %313 : vector<1x1xf32>
    %322 = arith.subf %320, %321 : vector<1x1xf32>
    %cst_46 = arith.constant 0.000000e+00 : f32
    %323 = vector.broadcast %cst_46 : f32 to vector<1x1xf32>
    %324 = arith.maximumf %322, %323 : vector<1x1xf32>
    %cst_47 = arith.constant 9.99999974E-6 : f32
    %325 = vector.broadcast %cst_47 : f32 to vector<1x1xf32>
    %326 = arith.addf %324, %325 : vector<1x1xf32>
    %327 = math.rsqrt %326 : vector<1x1xf32>
    %328 = vector.broadcast %313 : vector<1x1xf32> to vector<8x128xf32>
    %329 = arith.subf %291, %328 : vector<8x128xf32>
    %c44 = arith.constant 44 : index
    %330 = memref.load %arg2[%c44] : memref<48xf32, #tpu.memory_space<smem>>
    %331 = vector.broadcast %330 : f32 to vector<1x1xf32>
    %332 = arith.mulf %327, %331 : vector<1x1xf32>
    %333 = vector.broadcast %332 : vector<1x1xf32> to vector<8x128xf32>
    %334 = arith.mulf %329, %333 : vector<8x128xf32>
    %c46 = arith.constant 46 : index
    %335 = memref.load %arg2[%c46] : memref<48xf32, #tpu.memory_space<smem>>
    %336 = vector.broadcast %335 : f32 to vector<8x128xf32>
    %337 = arith.addf %334, %336 : vector<8x128xf32>
    %338 = arith.mulf %306, %12 : vector<8x128xf32>
    %cst_48 = arith.constant dense<0.000000e+00> : vector<8xf32>
    %339 = vector.multi_reduction <add>, %338, %cst_48 [1] : vector<8x128xf32> to vector<8xf32>
    %340 = vector.shape_cast %339 : vector<8xf32> to vector<8x1xf32>
    %cst_49 = arith.constant dense<0.000000e+00> : vector<1xf32>
    %341 = vector.multi_reduction <add>, %340, %cst_49 [0] : vector<8x1xf32> to vector<1xf32>
    %342 = vector.shape_cast %341 : vector<1xf32> to vector<1x1xf32>
    %343 = vector.broadcast %0 : f32 to vector<1x1xf32>
    %344 = arith.mulf %342, %343 : vector<1x1xf32>
    %345 = arith.mulf %338, %306 : vector<8x128xf32>
    %cst_50 = arith.constant dense<0.000000e+00> : vector<8xf32>
    %346 = vector.multi_reduction <add>, %345, %cst_50 [1] : vector<8x128xf32> to vector<8xf32>
    %347 = vector.shape_cast %346 : vector<8xf32> to vector<8x1xf32>
    %cst_51 = arith.constant dense<0.000000e+00> : vector<1xf32>
    %348 = vector.multi_reduction <add>, %347, %cst_51 [0] : vector<8x1xf32> to vector<1xf32>
    %349 = vector.shape_cast %348 : vector<1xf32> to vector<1x1xf32>
    %350 = vector.broadcast %0 : f32 to vector<1x1xf32>
    %351 = arith.mulf %349, %350 : vector<1x1xf32>
    %352 = arith.mulf %344, %344 : vector<1x1xf32>
    %353 = arith.subf %351, %352 : vector<1x1xf32>
    %cst_52 = arith.constant 0.000000e+00 : f32
    %354 = vector.broadcast %cst_52 : f32 to vector<1x1xf32>
    %355 = arith.maximumf %353, %354 : vector<1x1xf32>
    %cst_53 = arith.constant 9.99999974E-6 : f32
    %356 = vector.broadcast %cst_53 : f32 to vector<1x1xf32>
    %357 = arith.addf %355, %356 : vector<1x1xf32>
    %358 = math.rsqrt %357 : vector<1x1xf32>
    %359 = vector.broadcast %344 : vector<1x1xf32> to vector<8x128xf32>
    %360 = arith.subf %306, %359 : vector<8x128xf32>
    %c45 = arith.constant 45 : index
    %361 = memref.load %arg2[%c45] : memref<48xf32, #tpu.memory_space<smem>>
    %362 = vector.broadcast %361 : f32 to vector<1x1xf32>
    %363 = arith.mulf %358, %362 : vector<1x1xf32>
    %364 = vector.broadcast %363 : vector<1x1xf32> to vector<8x128xf32>
    %365 = arith.mulf %360, %364 : vector<8x128xf32>
    %c47 = arith.constant 47 : index
    %366 = memref.load %arg2[%c47] : memref<48xf32, #tpu.memory_space<smem>>
    %367 = vector.broadcast %366 : f32 to vector<8x128xf32>
    %368 = arith.addf %365, %367 : vector<8x128xf32>
    %369 = arith.subf %368, %337 : vector<8x128xf32>
    %370 = math.absf %369 : vector<8x128xf32>
    %cst_54 = arith.constant 0.000000e+00 : f32
    %371 = vector.broadcast %cst_54 : f32 to vector<8x128xf32>
    %372 = arith.subf %371, %370 : vector<8x128xf32>
    %373 = math.exp %372 : vector<8x128xf32>
    %cst_55 = arith.constant 1.000000e+00 : f32
    %374 = vector.broadcast %cst_55 : f32 to vector<8x128xf32>
    %375 = arith.addf %374, %373 : vector<8x128xf32>
    %cst_56 = arith.constant 1.000000e+00 : f32
    %376 = vector.broadcast %cst_56 : f32 to vector<8x128xf32>
    %377 = arith.divf %376, %375 : vector<8x128xf32>
    %378 = arith.mulf %373, %377 : vector<8x128xf32>
    %cst_57 = arith.constant 0.000000e+00 : f32
    %379 = vector.broadcast %cst_57 : f32 to vector<8x128xf32>
    %380 = arith.cmpf oge, %369, %379 : vector<8x128xf32>
    %381 = arith.select %380, %378, %377 : vector<8x128xi1>, vector<8x128xf32>
    %382 = arith.select %380, %377, %378 : vector<8x128xi1>, vector<8x128xf32>
    %c0_58 = arith.constant 0 : index
    %c0_59 = arith.constant 0 : index
    %c0_60 = arith.constant 0 : index
    %383 = vector.load %arg4[%c0_58, %c0_59, %c0_60] : memref<2x8x128xf32, #tpu.memory_space<vmem>>, vector<1x8x128xf32>
    %384 = vector.shape_cast %383 : vector<1x8x128xf32> to vector<8x128xf32>
    %385 = vector.shape_cast %381 : vector<8x128xf32> to vector<1x8x128xf32>
    tpu.vector_store %arg4[%c0_58, %c0_59, %c0_60], %385 {strides = array<i32>} : memref<2x8x128xf32, #tpu.memory_space<vmem>>, vector<1x8x128xf32>,
    %c1_61 = arith.constant 1 : index
    %c0_62 = arith.constant 0 : index
    %c0_63 = arith.constant 0 : index
    %386 = vector.load %arg4[%c1_61, %c0_62, %c0_63] : memref<2x8x128xf32, #tpu.memory_space<vmem>>, vector<1x8x128xf32>
    %387 = vector.shape_cast %386 : vector<1x8x128xf32> to vector<8x128xf32>
    %388 = vector.shape_cast %382 : vector<8x128xf32> to vector<1x8x128xf32>
    tpu.vector_store %arg4[%c1_61, %c0_62, %c0_63], %388 {strides = array<i32>} : memref<2x8x128xf32, #tpu.memory_space<vmem>>, vector<1x8x128xf32>,
    return
  }
}

</mosaic_0001>

<bundles_post_ra>
// kernel: tpu_custom_call.1
= control target key start
LH: loop header
LB: loop body
LE: loop exit
PB: predicated region body
PF: predicated region fallthrough
CT: control target
= control target key end

     0   :  { %11 = vsyncpa [#allocation7], 0  ;;  %s870_s0 = inlined_call_operand.<no memory space> [shape: s32[1], index: 0, kind: input, shape index: {}]   ;;  %s871_s1 = inlined_call_operand.<no memory space> [shape: f32[1], index: 1, kind: input, shape index: {}]   ;;  %s872_s2 = inlined_call_operand.vmem [shape: f32[48], index: 2, kind: input, shape index: {}]   ;;  %s873_s3 = inlined_call_operand.hbm [shape: f32[5,8,128], index: 3, kind: input, shape index: {}]   ;;  %s874_s4 = inlined_call_operand.hbm [shape: f32[2,8,128], index: 4, kind: output, shape index: {}]  }
   0x1   :  { %12 = vsyncpa [#allocation5], 0 }
   0x2   :  { %13 = vsyncpa [#allocation6], 0  ;;  %s24_s17 = sshll.u32 %s872_s2, 4  ;;  %s25_s17 = int_to_ptr.vmem [resolvable:$true] %s24_s17 }
   0x3   :  { %s528_s18 = scalar_lea.vmem %s25_s17, 16  ;;  %p533_p1 = scmp.lt.s32.totalorder %s25_s17, %s25_s17 }
   0x4   :  { %p529_p0 = scmp.ne.s32.totalorder %s25_s17, %s528_s18  ;;  %p534_p2 = scmp.lt.s32.totalorder %s528_s18, %s528_s18 }
   0x6   :  { %p535_p3 = por %p534_p2, %p533_p1 }
   0x8   :  { %p536_p4 = pnand %p535_p3, %p529_p0 }
   0xa   :  { %539 = shalt.err (!%p536_p4)
}
   0xb   :  { %s586_s19 = smov [#allocation4]   ;;  %s587_s20 = smov [#allocation8]  }
   0xc   :  { %27 = dma.vmem_to_smem %s25_s17, 16, %s586_s19, [#allocation7]  }
   0xd   :  { %s33_s21 = sshll.u32 %s587_s20, 4  ;;  %s34_s21 = int_to_ptr.vmem [resolvable:$true] %s33_s21 }
   0xe   :  { %s548_s22 = scalar_lea.vmem %s34_s21, 640  ;;  %p553_p6 = scmp.lt.s32.totalorder %s34_s21, %s34_s21 }
   0xf   :  { %p549_p5 = scmp.ne.s32.totalorder %s34_s21, %s548_s22  ;;  %p554_p7 = scmp.lt.s32.totalorder %s548_s22, %s548_s22 }
  0x11   :  { %p555_p8 = por %p554_p7, %p553_p6 }
  0x13   :  { %p556_p9 = pnand %p555_p8, %p549_p5 }
  0x15   :  { %559 = shalt.err (!%p556_p9)
}
  0x16   :  { %s588_s2 = smov 128   ;;  %s589_s23 = smov 8  }
  0x17   :  { %39 = dma.hbm_to_vmem [thread:$0]  %s873_s3, 640, %s34_s21, [#allocation5], %s588_s2, %s588_s2, %s589_s23  }
  0x18   :  { %580 = dma.done.wait [#allocation7], 16  }
  0x19   :  { %581 = vsyncadd [#allocation7], 4294967280 }
  0x1a   :  { %582 = dma.done.wait [#allocation5], 640  }
  0x1b   :  { %583 = vsyncadd [#allocation5], 4294966656 }
  0x1c   :  { %46 = sfence }
  0x1d   :  { %v626_v0 = vld [vmem:[#allocation8] sm:$0xff]  ;;  %v628_v1 = vld [vmem:[#allocation8 + $0x8] sm:$0xff]  ;;  %v630_v2 = vld [vmem:[#allocation8 + $0x10] sm:$0xff]  ;;  %s88_s26 = sld [smem:[#allocation4]]  ;;  %v49_v3 = vlaneseq  ;;  %v55_v26 = vstv %s870_s0 }
  0x1e   :  { %v68_v4 = vadd.f32 %v628_v1, %v626_v0  ;;  %s459_s27 = sld [smem:[#allocation4 + $0x4]]  ;;  %v634_v5 = vld [vmem:[#allocation8 + $0x18] sm:$0xff]  ;;  %v639_v7 = vld [vmem:[#allocation8 + $0x20] sm:$0xff] }
  0x1f   :  { %s460_s3 = sld [smem:[#allocation4 + $0x8]]  ;;  %v50_v8 = vshrl.u32 %v49_v3, 7  ;;  %v52_v16 = vand.u32 127, %v49_v3 }
  0x20   :  { %v69_v6 = vadd.f32 %v68_v4, %v630_v2  ;;  %s637_s28 = sld [smem:[#allocation4 + $0xc]] }
  0x21   :  { %s641_s29 = sld [smem:[#allocation4 + $0x10]]  ;;  %v53_v17 = vmul.u32 128, %v50_v8 }
  0x22   :  { %v70_v9 = vadd.f32 %v69_v6, %v634_v5  ;;  %s644_s30 = sld [smem:[#allocation4 + $0x14]] }
  0x23   :  { %v89_v10 = vstv %s88_s26  ;;  %s646_s5 = sld [smem:[#allocation4 + $0x18]]  ;;  %v54_v28 = vadd.s32 %v53_v17, %v52_v16 }
  0x24   :  { %v71_v11 = vadd.f32 %v70_v9, %v639_v7  ;;  %v90_v12 = vmul.f32 %v89_v10, %v626_v0  ;;  %v92_v13 = vstv %s459_s27  ;;  %s650_s6 = sld [smem:[#allocation4 + $0x1]] }
  0x25   :  { %v93_v14 = vmul.f32 %v92_v13, %v628_v1  ;;  %v96_v15 = vstv %s460_s3  ;;  %s653_s7 = sld [smem:[#allocation4 + $0x5]]  ;;  %vm701_vm0 = vcmp.lt.s32.totalorder %v54_v28, %v55_v26 }
  0x26   :  { %v655_v18 = vmul.f32 0.2, %v71_v11  ;;  %s657_s8 = sld [smem:[#allocation4 + $0x9]]  ;;  %v97_v20 = vmul.f32 %v96_v15, %v630_v2  ;;  %v100_v21 = vstv %s637_s28 }
  0x27   :  { %v94_v19 = vadd.f32 %v93_v14, %v90_v12  ;;  %s661_s9 = sld [smem:[#allocation4 + $0xd]]  ;;  %v101_v33 = vmul.f32 %v100_v21, %v634_v5  ;;  %v104_v34 = vstv %s641_s29  ;;  %v590_v21 = vmov 0.0  }
  0x28   :  { %v73_v22 = vsub.f32 %v626_v0, %v655_v18  ;;  %v75_v23 = vsub.f32 %v628_v1, %v655_v18  ;;  %v78_v24 = vsub.f32 %v630_v2, %v655_v18  ;;  %v81_v25 = vsub.f32 %v634_v5, %v655_v18  ;;  %s671_s10 = sld [smem:[#allocation4 + $0x11]] }
  0x29   :  { %v84_v27 = vsub.f32 %v639_v7, %v655_v18  ;;  %s678_s13 = sld [smem:[#allocation4 + $0x15]]  ;;  %v98_v32 = vadd.f32 %v97_v20, %v94_v19  ;;  %v112_v45 = vstv %s646_s5  ;;  %v105_v53 = vmul.f32 %v104_v34, %v639_v7 }
  0x2a   :  { %v74_v29 = vmul.f32 %v73_v22, %v73_v22  ;;  %v76_v30 = vmul.f32 %v75_v23, %v75_v23  ;;  %v79_v31 = vmul.f32 %v78_v24, %v78_v24  ;;  %s680_s14 = sld [smem:[#allocation4 + $0x19]]  ;;  %v116_v35 = vstv %s650_s6 }
  0x2b   :  { %s685_s0 = sld [smem:[#allocation4 + $0x2]]  ;;  %v82_v37 = vmul.f32 %v81_v25, %v81_v25  ;;  %v117_v38 = vmul.f32 %v116_v35, %v626_v0  ;;  %v119_v39 = vstv %s653_s7  ;;  %v85_v40 = vmul.f32 %v84_v27, %v84_v27 }
  0x2c   :  { %v77_v36 = vadd.f32 %v76_v30, %v74_v29  ;;  %s689_s15 = sld [smem:[#allocation4 + $0x6]]  ;;  %v120_v41 = vmul.f32 %v119_v39, %v628_v1  ;;  %v123_v42 = vstv %s657_s8  ;;  %v102_v52 = vadd.f32 %v101_v33, %v98_v32 }
  0x2d   :  { %v127_v43 = vstv %s661_s9  ;;  %s694_s16 = sld [smem:[#allocation4 + $0xa]]  ;;  %v124_v46 = vmul.f32 %v123_v42, %v630_v2  ;;  %v108_v54 = vstv %s644_s30  ;;  %v113_v55 = vmul.f32 %v112_v45, %v655_v18 }
  0x2e   :  { %v80_v44 = vadd.f32 %v79_v31, %v77_v36  ;;  %v131_v47 = vstv %s671_s10  ;;  %s699_s17 = sld [smem:[#allocation4 + $0xe]]  ;;  %v121_v49 = vadd.f32 %v120_v41, %v117_v38  ;;  %v128_v50 = vmul.f32 %v127_v43, %v634_v5 }
  0x2f   :  { %s706_s18 = sld [smem:[#allocation4 + $0x12]]  ;;  %v132_v57 = vmul.f32 %v131_v47, %v639_v7  ;;  %v135_v60 = vstv %s678_s13  ;;  %v106_v9 = vadd.f32 %v105_v53, %v102_v52  ;;  %v741_v22 = vsel %vm701_vm0, 1.0, %v590_v21 }
  0x30   :  { %v83_v51 = vadd.f32 %v82_v37, %v80_v44  ;;  %s710_s19 = sld [smem:[#allocation4 + $0x16]]  ;;  %v125_v56 = vadd.f32 %v124_v46, %v121_v49  ;;  %v139_v3 = vstv %s680_s14 }
  0x31   :  { %v143_v58 = vstv %s685_s0  ;;  %s715_s20 = sld [smem:[#allocation4 + $0x1a]]  ;;  %v140_v19 = vmul.f32 %v139_v3, %v655_v18 }
  0x32   :  { %v86_v59 = vadd.f32 %v85_v40, %v83_v51  ;;  %v144_v61 = vmul.f32 %v143_v58, %v626_v0  ;;  %v146_v62 = vstv %s689_s15  ;;  %s720_s21 = sld [smem:[#allocation4 + $0x3]]  ;;  %v129_v63 = vadd.f32 %v128_v50, %v125_v56 }
  0x33   :  { %v147_v4 = vmul.f32 %v146_v62, %v628_v1  ;;  %v150_v6 = vstv %s694_s16  ;;  %s725_s22 = sld [smem:[#allocation4 + $0x7]] }
  0x34   :  { %v87_v8 = vmul.f32 0.25, %v86_v59  ;;  %v151_v10 = vmul.f32 %v150_v6, %v630_v2  ;;  %v154_v11 = vstv %s699_s17  ;;  %s729_s24 = sld [smem:[#allocation4 + $0xb]]  ;;  %v133_v12 = vadd.f32 %v132_v57, %v129_v63 }
  0x35   :  { %v148_v13 = vadd.f32 %v147_v4, %v144_v61  ;;  %v155_v14 = vmul.f32 %v154_v11, %v634_v5  ;;  %v158_v15 = vstv %s706_s18  ;;  %s733_s25 = sld [smem:[#allocation4 + $0xf]] }
  0x36   :  { %v109_v16 = vmul.f32 %v108_v54, %v87_v8  ;;  %v136_v17 = vmul.f32 %v135_v60, %v87_v8  ;;  %v162_v20 = vstv %s710_s19  ;;  %s737_s26 = sld [smem:[#allocation4 + $0x13]]  ;;  %v159_v24 = vmul.f32 %v158_v15, %v639_v7 }
  0x37   :  { %v152_v23 = vadd.f32 %v151_v10, %v148_v13  ;;  %s744_s27 = sld [smem:[#allocation4 + $0x17]]  ;;  %v166_v27 = vstv %s715_s20  ;;  %v163_v30 = vmul.f32 %v162_v20, %v87_v8 }
  0x38   :  { %v110_v25 = vadd.f32 %v109_v16, %v106_v9  ;;  %v137_v26 = vadd.f32 %v136_v17, %v133_v12  ;;  %v170_v28 = vstv %s720_s21  ;;  %s748_s3 = sld [smem:[#allocation4 + $0x1b]]  ;;  %v167_v38 = vmul.f32 %v166_v27, %v655_v18 }
  0x39   :  { %v156_v29 = vadd.f32 %v155_v14, %v152_v23  ;;  %v171_v31 = vmul.f32 %v170_v28, %v626_v0  ;;  %v173_v32 = vstv %s725_s22  ;;  %s488_s30 = sld [smem:[#allocation4 + $0x1d]]  ;;  %s591_s22 = smov [#allocation9]  }
  0x3a   :  { %v752_v33 = vadd.f32 %v113_v55, %v110_v25  ;;  %v754_v34 = vadd.f32 %v140_v19, %v137_v26  ;;  %v174_v35 = vmul.f32 %v173_v32, %v628_v1  ;;  %v177_v36 = vstv %s729_s24  ;;  %s808_s5 = sld [smem:[#allocation4 + $0x20]]  ;;  %s445_s24 = sshll.u32 %s591_s22, 4  ;;  %s446_s24 = int_to_ptr.vmem [resolvable:$true] %s445_s24 }
  0x3b   :  { %v160_v37 = vadd.f32 %v159_v24, %v156_v29  ;;  %v178_v39 = vmul.f32 %v177_v36, %v630_v2  ;;  %v181_v40 = vstv %s733_s25  ;;  %v786_v19 = vstv %s871_s1  ;;  %s486_s1 = sld [smem:[#allocation4 + $0x1c]]  ;;  %s560_s25 = scalar_lea.vmem %s446_s24, 256 }
  0x3c   :  { %v196_v41 = vmul.f32 %v741_v22, %v752_v33  ;;  %v230_v0 = vmul.f32 %v741_v22, %v754_v34  ;;  %v175_v42 = vadd.f32 %v174_v35, %v171_v31  ;;  %v182_v43 = vmul.f32 %v181_v40, %v634_v5  ;;  %s810_s6 = sld [smem:[#allocation4 + $0x25]]  ;;  %p561_p10 = scmp.ne.s32.totalorder %s446_s24, %s560_s25 }
  0x3d   :  { %v164_v44 = vadd.f32 %v163_v30, %v160_v37  ;;  %v185_v45 = vstv %s737_s26  ;;  %v189_v1 = vstv %s744_s27  ;;  %s812_s7 = sld [smem:[#allocation4 + $0x24]]  ;;  %p565_p11 = scmp.lt.s32.totalorder %s446_s24, %s446_s24 }
  0x3e   :  { %197 = vadd.xlane.f32.xlu0 %v196_v41  ;;  %v207_v46 = vmul.f32 %v196_v41, %v752_v33  ;;  %v179_v47 = vadd.f32 %v178_v39, %v175_v42  ;;  %v186_v48 = vmul.f32 %v185_v45, %v639_v7  ;;  %v193_v49 = vstv %s748_s3  ;;  %s490_s8 = sld [smem:[#allocation4 + $0x1e]]  ;;  %p566_p12 = scmp.lt.s32.totalorder %s560_s25, %s560_s25 }
  0x3f   :  { %v770_v2 = vadd.f32 %v167_v38, %v164_v44  ;;  %v240_v50 = vmul.f32 %v230_v0, %v754_v34  ;;  %v190_v52 = vmul.f32 %v189_v1, %v87_v8  ;;  %v194_v54 = vmul.f32 %v193_v49, %v655_v18  ;;  %s489_s9 = sld [smem:[#allocation4 + $0x21]] }
  0x40   :  { %208 = vadd.xlane.f32.xlu1 %v207_v46  ;;  %v183_v51 = vadd.f32 %v182_v43, %v179_v47  ;;  %s814_s10 = sld [smem:[#allocation4 + $0x27]]  ;;  %p567_p13 = por %p566_p12, %p565_p11 }
  0x41   :  { %v263_v5 = vmul.f32 %v741_v22, %v770_v2  ;;  %s816_s11 = sld [smem:[#allocation4 + $0x26]] }
  0x42   :  { %231 = vadd.xlane.f32.xlu0 %v230_v0  ;;  %v187_v53 = vadd.f32 %v186_v48, %v183_v51  ;;  %s491_s12 = sld [smem:[#allocation4 + $0x22]]  ;;  %p568_p0 = pnand %p567_p13, %p561_p10 }
  0x43   :  { %v273_v55 = vmul.f32 %v263_v5, %v770_v2  ;;  %s818_s13 = sld [smem:[#allocation4 + $0x1f]] }
  0x44   :  { %241 = vadd.xlane.f32.xlu1 %v240_v50  ;;  %v191_v56 = vadd.f32 %v190_v52, %v187_v53  ;;  %s820_s14 = sld [smem:[#allocation4 + $0x29]] }
  0x45   :  { %s826_s0 = sld [smem:[#allocation4 + $0x28]] }
  0x46   :  { %264 = vadd.xlane.f32.xlu0 %v263_v5  ;;  %v778_v7 = vadd.f32 %v194_v54, %v191_v56  ;;  %s828_s15 = sld [smem:[#allocation4 + $0x23]] }
  0x47   :  { %s831_s16 = sld [smem:[#allocation4 + $0x2b]] }
  0x48   :  { %274 = vadd.xlane.f32.xlu1 %v273_v55  ;;  %v296_v57 = vmul.f32 %v741_v22, %v778_v7  ;;  %s834_s17 = sld [smem:[#allocation4 + $0x2a]] }
  0x49   :  { %s504_s18 = sld [smem:[#allocation4 + $0x2d]] }
  0x4a   :  { %297 = vadd.xlane.f32.xlu0 %v296_v57  ;;  %v306_v58 = vmul.f32 %v296_v57, %v778_v7  ;;  %s502_s19 = sld [smem:[#allocation4 + $0x2c]] }
  0x4b   :  { %s505_s20 = sld [smem:[#allocation4 + $0x2f]] }
  0x4c   :  { %307 = vadd.xlane.f32.xlu1 %v306_v58  ;;  %s503_s21 = sld [smem:[#allocation4 + $0x2e]] }
  0xc7   :  { %v198_v59 = vpop.xlane.xlu0 %197 }
  0xc8   :  { %v199_v60 = vrot.slane %v198_v59, 4 }
  0xc9   :  { %v209_v61 = vpop.xlane.xlu1 %208 }
  0xca   :  { %v200_v62 = vadd.f32 %v199_v60, %v198_v59  ;;  %v210_v18 = vrot.slane %v209_v61, 4 }
  0xcb   :  { %v232_v63 = vpop.xlane.xlu0 %231 }
  0xcc   :  { %v201_v3 = vrot.slane %v200_v62, 2  ;;  %v211_v4 = vadd.f32 %v210_v18, %v209_v61  ;;  %v233_v6 = vrot.slane %v232_v63, 4 }
  0xcd   :  { %v242_v8 = vpop.xlane.xlu1 %241 }
  0xce   :  { %v202_v9 = vadd.f32 %v201_v3, %v200_v62  ;;  %v212_v10 = vrot.slane %v211_v4, 2  ;;  %v234_v11 = vadd.f32 %v233_v6, %v232_v63  ;;  %v243_v12 = vrot.slane %v242_v8, 4 }
  0xcf   :  { %v265_v13 = vpop.xlane.xlu0 %264 }
  0xd0   :  { %v203_v14 = vrot.slane %v202_v9, 1  ;;  %v213_v15 = vadd.f32 %v212_v10, %v211_v4  ;;  %v235_v16 = vrot.slane %v234_v11, 2  ;;  %v244_v17 = vadd.f32 %v243_v12, %v242_v8 }
  0xd1   :  { %v266_v20 = vrot.slane %v265_v13, 4  ;;  %v275_v21 = vpop.xlane.xlu1 %274 }
  0xd2   :  { %v204_v23 = vadd.f32 %v203_v14, %v202_v9  ;;  %v214_v24 = vrot.slane %v213_v15, 1  ;;  %v236_v25 = vadd.f32 %v235_v16, %v234_v11  ;;  %v245_v26 = vrot.slane %v244_v17, 2 }
  0xd3   :  { %v267_v27 = vadd.f32 %v266_v20, %v265_v13  ;;  %v276_v28 = vrot.slane %v275_v21, 4  ;;  %v298_v29 = vpop.xlane.xlu0 %297 }
  0xd4   :  { %v789_v30 = vmul.f32 %v786_v19, %v204_v23  ;;  %v215_v31 = vadd.f32 %v214_v24, %v213_v15  ;;  %v237_v32 = vrot.slane %v236_v25, 1  ;;  %v246_v35 = vadd.f32 %v245_v26, %v244_v17 }
  0xd5   :  { %v268_v36 = vrot.slane %v267_v27, 2  ;;  %v277_v37 = vadd.f32 %v276_v28, %v275_v21  ;;  %v299_v38 = vrot.slane %v298_v29, 4  ;;  %v308_v39 = vpop.xlane.xlu1 %307  ;;  %v257_v26 = vstv %s488_s30 }
  0xd6   :  { %v217_v40 = vmul.f32 %v789_v30, %v789_v30  ;;  %v216_v41 = vmul.f32 %v215_v31, %v786_v19  ;;  %v238_v0 = vadd.f32 %v237_v32, %v236_v25  ;;  %v247_v42 = vrot.slane %v246_v35, 1 }
  0xd7   :  { %v269_v43 = vadd.f32 %v268_v36, %v267_v27  ;;  %v278_v44 = vrot.slane %v277_v37, 2  ;;  %v300_v45 = vadd.f32 %v299_v38, %v298_v29  ;;  %v309_v47 = vrot.slane %v308_v39, 4 }
  0xd8   :  { %v218_v1 = vsub.f32 %v216_v41, %v217_v40  ;;  %v795_v46 = vmul.f32 %v238_v0, %v786_v19  ;;  %v248_v48 = vadd.f32 %v247_v42, %v246_v35  ;;  %v224_v25 = vstv %s486_s1 }
  0xd9   :  { %v270_v49 = vrot.slane %v269_v43, 1  ;;  %v279_v50 = vadd.f32 %v278_v44, %v277_v37  ;;  %v301_v51 = vrot.slane %v300_v45, 2  ;;  %v310_v53 = vadd.f32 %v309_v47, %v308_v39 }
  0xda   :  { %v219_v52 = vmax.f32 %v218_v1, 0.0  ;;  %v250_v5 = vmul.f32 %v795_v46, %v795_v46  ;;  %v249_v54 = vmul.f32 %v248_v48, %v786_v19  ;;  %v222_v29 = vsub.f32 %v752_v33, %v789_v30 }
  0xdb   :  { %v271_v55 = vadd.f32 %v270_v49, %v269_v43  ;;  %v280_v56 = vrot.slane %v279_v50, 1  ;;  %v302_v57 = vadd.f32 %v301_v51, %v300_v45  ;;  %v311_v59 = vrot.slane %v310_v53, 2 }
  0xdc   :  { %v220_v58 = vadd.f32 1e-05, %v219_v52  ;;  %v251_v60 = vsub.f32 %v249_v54, %v250_v5  ;;  %v255_v31 = vsub.f32 %v754_v34, %v795_v46  ;;  %v290_v35 = vstv %s490_s8 }
  0xdd   :  { %v272_v61 = vmul.f32 %v271_v55, %v786_v19  ;;  %v281_v62 = vadd.f32 %v280_v56, %v279_v50  ;;  %v303_v18 = vrot.slane %v302_v57, 1  ;;  %v312_v63 = vadd.f32 %v311_v59, %v310_v53 }
  0xde   :  { %512 = vrsqrt.f32 %v220_v58  ;;  %v252_v3 = vmax.f32 %v251_v60, 0.0  ;;  %v261_v38 = vstv %s489_s9  ;;  %v228_v40 = vstv %s808_s5 }
  0xdf   :  { %v283_v4 = vmul.f32 %v272_v61, %v272_v61  ;;  %v282_v6 = vmul.f32 %v281_v62, %v786_v19  ;;  %v304_v8 = vadd.f32 %v303_v18, %v302_v57  ;;  %v313_v9 = vrot.slane %v312_v63, 1 }
  0xe0   :  { %v253_v10 = vadd.f32 1e-05, %v252_v3  ;;  %v288_v33 = vsub.f32 %v770_v2, %v272_v61  ;;  %v294_v41 = vstv %s491_s12  ;;  %v348_v0 = vstv %s814_s10 }
  0xe1   :  { %v284_v11 = vsub.f32 %v282_v6, %v283_v4  ;;  %v803_v12 = vmul.f32 %v304_v8, %v786_v19  ;;  %v314_v13 = vadd.f32 %v313_v9, %v312_v63  ;;  %v323_v44 = vstv %s818_s13 }
  0xe2   :  { %514 = vrsqrt.f32 %v253_v10  ;;  %v333_v45 = vstv %s816_s11  ;;  %v345_v1 = vstv %s810_s6  ;;  %v352_v48 = vstv %s820_s14 }
  0xe3   :  { %v285_v14 = vmax.f32 %v284_v11, 0.0  ;;  %v316_v15 = vmul.f32 %v803_v12, %v803_v12  ;;  %v315_v16 = vmul.f32 %v314_v13, %v786_v19  ;;  %v330_v49 = vstv %s812_s7 }
  0xe4   :  { %v337_v50 = vstv %s826_s0  ;;  %v321_v2 = vsub.f32 %v778_v7, %v803_v12  ;;  %v327_v53 = vstv %s828_s15  ;;  %v356_v59 = vstv %s831_s16 }
  0xe5   :  { %v286_v17 = vadd.f32 1e-05, %v285_v14  ;;  %v317_v20 = vsub.f32 %v315_v16, %v316_v15  ;;  %v341_v60 = vstv %s834_s17 }
  0xe7   :  { %516 = vrsqrt.f32 %v286_v17  ;;  %v318_v21 = vmax.f32 %v317_v20, 0.0 }
  0xe9   :  { %v319_v23 = vadd.f32 1e-05, %v318_v21 }
  0xeb   :  { %v513_v24 = vpop.eup %512  ;;  %518 = vrsqrt.f32 %v319_v23 }
  0xec   :  { %v225_v27 = vmul.f32 %v513_v24, %v224_v25 }
  0xee   :  { %v226_v36 = vmul.f32 %v225_v27, %v222_v29 }
  0xef   :  { %v515_v28 = vpop.eup %514 }
  0xf0   :  { %v258_v32 = vmul.f32 %v515_v28, %v257_v26  ;;  %v229_v42 = vadd.f32 %v228_v40, %v226_v36 }
  0xf2   :  { %v259_v37 = vmul.f32 %v258_v32, %v255_v31  ;;  %v346_v54 = vmul.f32 %v345_v1, %v229_v42  ;;  %v331_v57 = vmul.f32 %v330_v49, %v229_v42 }
  0xf4   :  { %v517_v39 = vpop.eup %516  ;;  %v262_v30 = vadd.f32 %v261_v38, %v259_v37 }
  0xf5   :  { %v291_v34 = vmul.f32 %v517_v39, %v290_v35 }
  0xf6   :  { %v349_v52 = vmul.f32 %v348_v0, %v262_v30  ;;  %v334_v5 = vmul.f32 %v333_v45, %v262_v30 }
  0xf7   :  { %v292_v43 = vmul.f32 %v291_v34, %v288_v33 }
  0xf8   :  { %v519_v46 = vpop.eup %518  ;;  %v350_v62 = vadd.f32 %v349_v52, %v346_v54  ;;  %v335_v18 = vadd.f32 %v334_v5, %v331_v57  ;;  %v419_v52 = vstv %s504_s18  ;;  %v386_v5 = vstv %s502_s19 }
  0xf9   :  { %v295_v47 = vadd.f32 %v294_v41, %v292_v43  ;;  %v324_v51 = vmul.f32 %v519_v46, %v323_v44 }
  0xfb   :  { %v325_v55 = vmul.f32 %v324_v51, %v321_v2  ;;  %v353_v56 = vmul.f32 %v352_v48, %v295_v47  ;;  %v338_v58 = vmul.f32 %v337_v50, %v295_v47 }
  0xfd   :  { %v328_v61 = vadd.f32 %v327_v53, %v325_v55  ;;  %v354_v63 = vadd.f32 %v353_v56, %v350_v62  ;;  %v339_v4 = vadd.f32 %v338_v58, %v335_v18  ;;  %v423_v58 = vstv %s505_s20 }
  0xff   :  { %v357_v3 = vmul.f32 %v356_v59, %v328_v61  ;;  %v342_v6 = vmul.f32 %v341_v60, %v328_v61  ;;  %v390_v59 = vstv %s503_s21 }
 0x101   :  { %v848_v8 = vadd.f32 %v357_v3, %v354_v63  ;;  %v850_v7 = vadd.f32 %v342_v6, %v339_v4 }
 0x103   :  { %v392_v9 = vmul.f32 %v741_v22, %v848_v8  ;;  %v359_v10 = vmul.f32 %v741_v22, %v850_v7 }
 0x105   :  { %393 = vadd.xlane.f32.xlu1 %v392_v9  ;;  %360 = vadd.xlane.f32.xlu0 %v359_v10  ;;  %v402_v11 = vmul.f32 %v392_v9, %v848_v8  ;;  %v369_v12 = vmul.f32 %v359_v10, %v850_v7 }
 0x109   :  { %403 = vadd.xlane.f32.xlu1 %v402_v11  ;;  %370 = vadd.xlane.f32.xlu0 %v369_v12 }
 0x18e   :  { %v394_v13 = vpop.xlane.xlu1 %393  ;;  %v361_v14 = vpop.xlane.xlu0 %360 }
 0x18f   :  { %v395_v15 = vrot.slane %v394_v13, 4  ;;  %v362_v16 = vrot.slane %v361_v14, 4 }
 0x191   :  { %v396_v17 = vadd.f32 %v395_v15, %v394_v13  ;;  %v363_v20 = vadd.f32 %v362_v16, %v361_v14 }
 0x192   :  { %v404_v21 = vpop.xlane.xlu1 %403  ;;  %v371_v23 = vpop.xlane.xlu0 %370 }
 0x193   :  { %v397_v24 = vrot.slane %v396_v17, 2  ;;  %v364_v25 = vrot.slane %v363_v20, 2  ;;  %v405_v26 = vrot.slane %v404_v21, 4  ;;  %v372_v22 = vrot.slane %v371_v23, 4 }
 0x195   :  { %v398_v27 = vadd.f32 %v397_v24, %v396_v17  ;;  %v365_v28 = vadd.f32 %v364_v25, %v363_v20  ;;  %v406_v29 = vadd.f32 %v405_v26, %v404_v21  ;;  %v373_v31 = vadd.f32 %v372_v22, %v371_v23 }
 0x197   :  { %v399_v32 = vrot.slane %v398_v27, 1  ;;  %v366_v35 = vrot.slane %v365_v28, 1  ;;  %v407_v36 = vrot.slane %v406_v29, 2  ;;  %v374_v37 = vrot.slane %v373_v31, 2 }
 0x199   :  { %v400_v38 = vadd.f32 %v399_v32, %v398_v27  ;;  %v367_v39 = vadd.f32 %v366_v35, %v365_v28  ;;  %v408_v40 = vadd.f32 %v407_v36, %v406_v29  ;;  %v375_v33 = vadd.f32 %v374_v37, %v373_v31 }
 0x19b   :  { %v409_v34 = vrot.slane %v408_v40, 1  ;;  %v376_v30 = vrot.slane %v375_v33, 1  ;;  %v401_v41 = vmul.f32 %v400_v38, %v786_v19  ;;  %v368_v0 = vmul.f32 %v367_v39, %v786_v19 }
 0x19d   :  { %v410_v42 = vadd.f32 %v409_v34, %v408_v40  ;;  %v377_v43 = vadd.f32 %v376_v30, %v375_v33  ;;  %v412_v44 = vmul.f32 %v401_v41, %v401_v41  ;;  %v379_v45 = vmul.f32 %v368_v0, %v368_v0 }
 0x19e   :  { %v417_v55 = vsub.f32 %v848_v8, %v401_v41 }
 0x19f   :  { %v411_v1 = vmul.f32 %v410_v42, %v786_v19  ;;  %v378_v46 = vmul.f32 %v377_v43, %v786_v19  ;;  %v384_v19 = vsub.f32 %v850_v7, %v368_v0 }
 0x1a1   :  { %v413_v47 = vsub.f32 %v411_v1, %v412_v44  ;;  %v380_v48 = vsub.f32 %v378_v46, %v379_v45 }
 0x1a3   :  { %v414_v49 = vmax.f32 %v413_v47, 0.0  ;;  %v381_v50 = vmax.f32 %v380_v48, 0.0 }
 0x1a5   :  { %v415_v2 = vadd.f32 1e-05, %v414_v49  ;;  %v382_v51 = vadd.f32 1e-05, %v381_v50 }
 0x1a7   :  { %520 = vrsqrt.f32 %v415_v2 }
 0x1a8   :  { %522 = vrsqrt.f32 %v382_v51 }
 0x1b4   :  { %v521_v53 = vpop.eup %520 }
 0x1b5   :  { %v523_v54 = vpop.eup %522  ;;  %v420_v56 = vmul.f32 %v521_v53, %v419_v52 }
 0x1b6   :  { %v387_v57 = vmul.f32 %v523_v54, %v386_v5 }
 0x1b7   :  { %v421_v60 = vmul.f32 %v420_v56, %v417_v55 }
 0x1b8   :  { %v388_v61 = vmul.f32 %v387_v57, %v384_v19 }
 0x1b9   :  { %v424_v62 = vadd.f32 %v423_v58, %v421_v60 }
 0x1ba   :  { %v391_v18 = vadd.f32 %v390_v59, %v388_v61 }
 0x1bc   :  { %v425_v63 = vsub.f32 %v424_v62, %v391_v18 }
 0x1be   :  { %v426_v3 = vand.u32 2147483647, %v425_v63  ;;  %vm434_vm1 = vcmp.ge.f32.partialorder %v425_v63, 0.0 }
 0x1c0   :  { %v427_v4 = vsub.f32 0.0, %v426_v3 }
 0x1c2   :  { %v428_v6 = vmul.f32 1.442695, %v427_v4 }
 0x1c4   :  { %524 = vpow2.f32 %v428_v6 }
 0x1d1   :  { %v525_v9 = vpop.eup %524 }
 0x1d2   :  { %v430_v10 = vadd.f32 1.0, %v525_v9 }
 0x1d4   :  { %526 = vrcp.f32 %v430_v10 }
 0x1e1   :  { %v527_v8 = vpop.eup %526 }
 0x1e2   :  { %v433_v11 = vmul.f32 %v527_v8, %v525_v9 }
 0x1e4   :  { %v435_v7 = vsel %vm434_vm1, %v433_v11, %v527_v8  ;;  %v436_v12 = vsel %vm434_vm1, %v527_v8, %v433_v11 }
 0x1e5   :  { %437 = vst [vmem:[#allocation9] sm:$0xff] %v435_v7  ;;  %439 = vst [vmem:[#allocation9 + $0x8] sm:$0xff] %v436_v12 }
 0x1e6   :  { %571 = shalt.err (!%p568_p0)
}
 0x1e7   :  { %451 = dma.vmem_to_hbm [thread:$0]  %s446_s24, 256, %s874_s4, [#allocation6], %s588_s2, %s588_s2, %s589_s23  }
 0x1e8   :  { %584 = dma.done.wait [#allocation6], 256  }
 0x1e9   :  { %585 = vsyncadd [#allocation6], 4294967040 }
 0x1ea   :  { %455 = vsyncpa [#allocation5], 1 }
 0x1eb   :  { %456 = vsyncpa [#allocation6], 1 }
 0x1ec   :  { %457 = vsyncpa [#allocation7], 1 }

</bundles_post_ra>
